<compile_context>
chip_gen: v7x
topology: tpu7x:2x2x1
jax: 0.10.0
libtpu: 0.0.40
codegen_flags: <defaults>
</compile_context>

<pallas_src>
import math

import jax
import jax.numpy as jnp
from jax.experimental import pallas as pl
from jax.experimental.pallas import tpu as pltpu


def _round_up(n: int, m: int) -> int:
    return ((n + m - 1) // m) * m


def _cdiv(a: int, b: int) -> int:
    return -(-a // b)


# --------------------------------------------------------------------------- #
# Kernels
# --------------------------------------------------------------------------- #
def _project_and_norm(x_ref, w_ref, pbg_ref):
    # (tile, K) @ (K, D) on the MXU with f32 accumulation; LayerNorm in f32.
    y = jnp.dot(x_ref[...], w_ref[...], preferred_element_type=jnp.float32)
    y = y + pbg_ref[0:1, :].astype(jnp.float32)                     # bias
    # var = E[y^2] - mean^2: both cross-lane reductions issue from y directly,
    # shortening the reduce -> center -> reduce dependency chain.
    mean = jnp.mean(y, axis=-1, keepdims=True)
    msq = jnp.mean(y * y, axis=-1, keepdims=True)
    var = msq - mean * mean
    scale = pbg_ref[1:2, :].astype(jnp.float32) * jax.lax.rsqrt(var + 1e-5)
    return (y - mean) * scale + pbg_ref[2:3, :].astype(jnp.float32)


def _traj_embed_kernel(x_ref, w_ref, pbg_ref, pe_ref, o_ref):
    # x_ref: (tile, K)  w_ref: (K, D)  pbg_ref: (3, D)  pe_ref: (tile, D)
    y = _project_and_norm(x_ref, w_ref, pbg_ref)
    o_ref[...] = (y + pe_ref[...].astype(jnp.float32)).astype(o_ref.dtype)


def _traj_embed_masked_kernel(x_ref, w_ref, pbg_ref, pe_ref, keep_ref, o_ref):
    # keep_ref: (tile, 1) float, 1.0 = real position, 0.0 = padded position.
    y = _project_and_norm(x_ref, w_ref, pbg_ref)
    pe = pe_ref[...].astype(jnp.float32) * keep_ref[...].astype(jnp.float32)
    o_ref[...] = (y + pe).astype(o_ref.dtype)


# --------------------------------------------------------------------------- #
# Host-side helpers
# --------------------------------------------------------------------------- #
def make_positional_encoding(max_seq_len: int, d_model: int) -> jnp.ndarray:
    """Sinusoidal PE, identical to the PyTorch buffer construction."""
    position = jnp.arange(max_seq_len, dtype=jnp.float32)[:, None]          # (L, 1)
    div_term = jnp.exp(jnp.arange(0, d_model, 2, dtype=jnp.float32)
                       * (-math.log(10000.0) / d_model))                     # (D/2,)
    pe = jnp.zeros((max_seq_len, d_model), dtype=jnp.float32)
    pe = pe.at[:, 0::2].set(jnp.sin(position * div_term))
    pe = pe.at[:, 1::2].set(jnp.cos(position * div_term))
    return pe


def _vmem_limit_bytes(tile: int, input_dim: int, d_model: int, masked: bool) -> int:
    """Honest VMEM budget: lane-padded streams, double-buffered, 2x headroom."""
    lane = 128
    k_lanes = _round_up(input_dim, lane)          # x tile is lane-padded in VMEM
    d_lanes = _round_up(d_model, lane)
    # x + pe + out (+ lane-padded keep) streams, per pipeline buffer.
    stream_lanes = k_lanes + 2 * d_lanes + (d_lanes if masked else 0)
    per_buffer_set = tile * stream_lanes * 4
    consts = (_round_up(input_dim, 8) + 8) * d_lanes * 4      # W^T + (b,gamma,beta)
    need = 2 * per_buffer_set + 2 * consts                    # double buffering
    return int(min(max(2 * need, 4 << 20), 48 << 20))         # < v7x's 64 MiB


def trajectory_embedding(x, params, pe, mask=None, *, seq_tile=2048):
    """
    x:      (B, S, input_dim)
    params: dict with 'w' (d_model, input_dim), 'b' (d_model,),
            'gamma' (d_model,), 'beta' (d_model,)
    pe:     (max_seq_len, d_model) positional-encoding buffer
    mask:   optional (B, S) bool (True = padded position, as in the PyTorch code)
    seq_tile: target rows per grid step (multiple of 8; sweep 1024/2048/4096).
    """
    B, S, input_dim = x.shape
    d_model = params["w"].shape[0]
    assert pe.shape[0] >= S, "sequence longer than positional-encoding buffer"
    assert seq_tile % 8 == 0 and seq_tile > 0

    # ---- sequence tile: no padding, Pallas clips the final partial block ----
    if S >= 8:
        tile = min(seq_tile, (S // 8) * 8)      # multiple of 8, <= S
        pe_in = pe                              # index_map addresses rows directly
    else:
        tile = S                                # block == full dim everywhere
        pe_in = pe[:S]                          # tiny slice so pe block dim == S
    num_s = _cdiv(S, tile)

    # v7x has 2 TensorCores: if batch alone can't feed them, split the seq axis
    # further so the (parallel, parallel) grid has at least ~4 steps to shard.
    if B * num_s < 4 and tile > 8:
        want_s = _cdiv(4, B)
        new_tile = max(8, _round_up(_cdiv(S, want_s), 8))
        if new_tile < tile:
            tile = new_tile
            num_s = _cdiv(S, tile)

    w_t = params["w"].T                                               # (K, D)
    pbg = jnp.stack([params["b"], params["gamma"], params["beta"]])   # (3, D)

    grid = (num_s, B)    # batch innermost -> PE/weight blocks reused across it

    in_specs = [
        pl.BlockSpec((None, tile, input_dim), lambda si, bi: (bi, si, 0)),  # x rows
        pl.BlockSpec((input_dim, d_model), lambda si, bi: (0, 0)),          # W^T
        pl.BlockSpec((3, d_model), lambda si, bi: (0, 0)),                  # b/gamma/beta
        pl.BlockSpec((tile, d_model), lambda si, bi: (si, 0)),              # PE tile
    ]
    inputs = [x, w_t, pbg, pe_in]

    if mask is not None:
        keep = (~mask).astype(jnp.float32)[:, :, None]                      # (B, S, 1)
        in_specs.append(pl.BlockSpec((None, tile, 1), lambda si, bi: (bi, si, 0)))
        inputs.append(keep)
        kernel = _traj_embed_masked_kernel
    else:
        kernel = _traj_embed_kernel

    out_spec = pl.BlockSpec((None, tile, d_model), lambda si, bi: (bi, si, 0))

    out = pl.pallas_call(
        kernel,
        out_shape=jax.ShapeDtypeStruct((B, S, d_model), x.dtype),
        grid=grid,
        in_specs=in_specs,
        out_specs=out_spec,
        compiler_params=pltpu.CompilerParams(
            dimension_semantics=("parallel", "parallel"),
            vmem_limit_bytes=_vmem_limit_bytes(tile, input_dim, d_model,
                                               mask is not None),
        ),
    )(*inputs)

    if mask is not None:
        # Reproduce the PyTorch broadcast quirk: x + pos_encoding.unsqueeze(0)
        # yields a leading singleton dim when mask is provided.
        out = out[None]
    return out


# --------------------------------------------------------------------------- #
# Pure-JAX reference (mirrors the PyTorch forward exactly)
# --------------------------------------------------------------------------- #
def _reference(x, params, pe, mask=None):
    y = jnp.einsum("bsi,di->bsd", x, params["w"],
                   precision=jax.lax.Precision.HIGHEST) + params["b"]
    mean = jnp.mean(y, axis=-1, keepdims=True)
    cent = y - mean
    var = jnp.mean(cent * cent, axis=-1, keepdims=True)
    y = cent * jax.lax.rsqrt(var + 1e-5) * params["gamma"] + params["beta"]
    S = x.shape[1]
    pe_s = pe[:S]
    if mask is not None:
        pe_eff = pe_s[None] * (~mask).astype(jnp.float32)[:, :, None]
        return y + pe_eff[None]          # quirk: leading singleton dim
    return y + pe_s[None]


if __name__ == "__main__":
    # Small shapes consistent with the module's example (d_model=128 keeps the
    # output lane-dense; input_dim=6 as in the docstring example).
    B, S, input_dim, d_model, max_seq_len = 2, 8, 6, 128, 64

    key = jax.random.PRNGKey(0)
    kx, kw, kb = jax.random.split(key, 3)

    bound = 1.0 / math.sqrt(input_dim)
    params = {
        "w": jax.random.uniform(kw, (d_model, input_dim), jnp.float32, -bound, bound),
        "b": jax.random.uniform(kb, (d_model,), jnp.float32, -bound, bound),
        "gamma": jnp.ones((d_model,), jnp.float32),
        "beta": jnp.zeros((d_model,), jnp.float32),
    }
    pe = make_positional_encoding(max_seq_len, d_model)
    x = jax.random.normal(kx, (B, S, input_dim), jnp.float32)

    # Unmasked path.
    out = jax.block_until_ready(trajectory_embedding(x, params, pe, mask=None))
    ref = _reference(x, params, pe, mask=None)
    assert out.shape == (B, S, d_model), out.shape
    assert jnp.allclose(out, ref, atol=1e-4, rtol=1e-4), "unmasked mismatch vs reference"

    # Masked path (True = padded position), reproduces the PyTorch broadcast quirk.
    mask = jnp.arange(S)[None, :] >= jnp.array([5, 8])[:, None]
    out_m = jax.block_until_ready(trajectory_embedding(x, params, pe, mask=mask))
    ref_m = _reference(x, params, pe, mask=mask)
    assert out_m.shape == (1, B, S, d_model), out_m.shape
    assert jnp.allclose(out_m, ref_m, atol=1e-4, rtol=1e-4), "masked mismatch vs reference"

    # Ragged sequence length (S not a multiple of the tile): exercises the
    # padding-free boundary-clipping path (partial last block).
    S2 = 13
    x2 = jax.random.normal(jax.random.PRNGKey(1), (B, S2, input_dim), jnp.float32)
    out_r = jax.block_until_ready(trajectory_embedding(x2, params, pe, mask=None))
    ref_r = _reference(x2, params, pe, mask=None)
    assert out_r.shape == (B, S2, d_model), out_r.shape
    assert jnp.allclose(out_r, ref_r, atol=1e-4, rtol=1e-4), "ragged-S mismatch vs reference"

    print("KERNEL_OK")
</pallas_src>

<mosaic_0001>
module attributes {stable_mosaic.version = 11 : i64} {
  func.func @_traj_embed_kernel(%arg0: i32, %arg1: i32, %arg2: memref<1x8x6xf32, #tpu.memory_space<vmem>>, %arg3: memref<6x128xf32, #tpu.memory_space<vmem>>, %arg4: memref<3x128xf32, #tpu.memory_space<vmem>>, %arg5: memref<8x128xf32, #tpu.memory_space<vmem>>, %arg6: memref<1x8x128xf32, #tpu.memory_space<vmem>>) attributes {dimension_semantics = [#tpu.dimension_semantics<parallel>, #tpu.dimension_semantics<parallel>], iteration_bounds = array<i64: 1, 2>, scalar_prefetch = 0 : i64, scratch_operands = 0 : i64, tpu.core_type = #tpu.core_type<tc>, window_params = [{transform_indices = @transform_0, window_bounds = array<i64: 1, 8, 6>}, {pipeline_mode = #tpu.pipeline_mode<synchronous>, transform_indices = @transform_1, window_bounds = array<i64: 6, 128>}, {pipeline_mode = #tpu.pipeline_mode<synchronous>, transform_indices = @transform_2, window_bounds = array<i64: 3, 128>}, {transform_indices = @transform_3, window_bounds = array<i64: 8, 128>}, {transform_indices = @transform_4, window_bounds = array<i64: 1, 8, 128>}]} {
    %c0 = arith.constant 0 : index
    %c0_0 = arith.constant 0 : index
    %c0_1 = arith.constant 0 : index
    %0 = vector.load %arg2[%c0, %c0_0, %c0_1] : memref<1x8x6xf32, #tpu.memory_space<vmem>>, vector<1x8x6xf32>
    %1 = vector.shape_cast %0 : vector<1x8x6xf32> to vector<8x6xf32>
    %c0_2 = arith.constant 0 : index
    %c0_3 = arith.constant 0 : index
    %2 = vector.load %arg3[%c0_2, %c0_3] : memref<6x128xf32, #tpu.memory_space<vmem>>, vector<6x128xf32>
    %cst = arith.constant dense<0.000000e+00> : vector<8x128xf32>
    %3 = tpu.matmul %1, %2, %cst {dimension_numbers = #tpu.dot_dimension_numbers<[1], [0], [0], [1], [0, 0, 1, 1], [], []>} : vector<8x6xf32>, vector<6x128xf32>, vector<8x128xf32> -> vector<8x128xf32>
    %c0_4 = arith.constant 0 : index
    %c0_5 = arith.constant 0 : index
    %4 = vector.load %arg4[%c0_4, %c0_5] : memref<3x128xf32, #tpu.memory_space<vmem>>, vector<1x128xf32>
    %5 = vector.broadcast %4 : vector<1x128xf32> to vector<8x128xf32>
    %6 = arith.addf %3, %5 : vector<8x128xf32>
    %cst_6 = arith.constant dense<0.000000e+00> : vector<8xf32>
    %7 = vector.multi_reduction <add>, %6, %cst_6 [1] : vector<8x128xf32> to vector<8xf32>
    %8 = vector.shape_cast %7 : vector<8xf32> to vector<8x1xf32>
    %cst_7 = arith.constant 1.280000e+02 : f32
    %9 = vector.broadcast %cst_7 : f32 to vector<8x1xf32>
    %10 = arith.divf %8, %9 : vector<8x1xf32>
    %11 = arith.mulf %6, %6 : vector<8x128xf32>
    %cst_8 = arith.constant dense<0.000000e+00> : vector<8xf32>
    %12 = vector.multi_reduction <add>, %11, %cst_8 [1] : vector<8x128xf32> to vector<8xf32>
    %13 = vector.shape_cast %12 : vector<8xf32> to vector<8x1xf32>
    %cst_9 = arith.constant 1.280000e+02 : f32
    %14 = vector.broadcast %cst_9 : f32 to vector<8x1xf32>
    %15 = arith.divf %13, %14 : vector<8x1xf32>
    %16 = arith.mulf %10, %10 : vector<8x1xf32>
    %17 = arith.subf %15, %16 : vector<8x1xf32>
    %c1 = arith.constant 1 : index
    %c0_10 = arith.constant 0 : index
    %18 = vector.load %arg4[%c1, %c0_10] : memref<3x128xf32, #tpu.memory_space<vmem>>, vector<1x128xf32>
    %cst_11 = arith.constant 9.99999974E-6 : f32
    %19 = vector.broadcast %cst_11 : f32 to vector<8x1xf32>
    %20 = arith.addf %17, %19 : vector<8x1xf32>
    %21 = math.rsqrt %20 : vector<8x1xf32>
    %22 = vector.broadcast %18 : vector<1x128xf32> to vector<8x128xf32>
    %23 = vector.broadcast %21 : vector<8x1xf32> to vector<8x128xf32>
    %24 = arith.mulf %22, %23 : vector<8x128xf32>
    %25 = vector.broadcast %10 : vector<8x1xf32> to vector<8x128xf32>
    %26 = arith.subf %6, %25 : vector<8x128xf32>
    %27 = arith.mulf %26, %24 : vector<8x128xf32>
    %c2 = arith.constant 2 : index
    %c0_12 = arith.constant 0 : index
    %28 = vector.load %arg4[%c2, %c0_12] : memref<3x128xf32, #tpu.memory_space<vmem>>, vector<1x128xf32>
    %29 = vector.broadcast %28 : vector<1x128xf32> to vector<8x128xf32>
    %30 = arith.addf %27, %29 : vector<8x128xf32>
    %c0_13 = arith.constant 0 : index
    %c0_14 = arith.constant 0 : index
    %31 = vector.load %arg5[%c0_13, %c0_14] : memref<8x128xf32, #tpu.memory_space<vmem>>, vector<8x128xf32>
    %32 = arith.addf %30, %31 : vector<8x128xf32>
    %c0_15 = arith.constant 0 : index
    %c0_16 = arith.constant 0 : index
    %c0_17 = arith.constant 0 : index
    %33 = vector.load %arg6[%c0_15, %c0_16, %c0_17] : memref<1x8x128xf32, #tpu.memory_space<vmem>>, vector<1x8x128xf32>
    %34 = vector.shape_cast %33 : vector<1x8x128xf32> to vector<8x128xf32>
    %35 = vector.shape_cast %32 : vector<8x128xf32> to vector<1x8x128xf32>
    tpu.vector_store %arg6[%c0_15, %c0_16, %c0_17], %35 {strides = array<i32>} : memref<1x8x128xf32, #tpu.memory_space<vmem>>, vector<1x8x128xf32>,
    return
  }
  func.func @transform_0(%arg0: i32, %arg1: i32) -> (i32, i32, i32) {
    %c0_i32 = arith.constant 0 : i32
    %c0_i32_0 = arith.constant 0 : i32
    return %arg1, %arg0, %c0_i32 : i32, i32, i32
  }
  func.func @transform_1(%arg0: i32, %arg1: i32) -> (i32, i32) {
    %c0_i32 = arith.constant 0 : i32
    %c0_i32_0 = arith.constant 0 : i32
    %c0_i32_1 = arith.constant 0 : i32
    return %c0_i32, %c0_i32_0 : i32, i32
  }
  func.func @transform_2(%arg0: i32, %arg1: i32) -> (i32, i32) {
    %c0_i32 = arith.constant 0 : i32
    %c0_i32_0 = arith.constant 0 : i32
    %c0_i32_1 = arith.constant 0 : i32
    return %c0_i32, %c0_i32_0 : i32, i32
  }
  func.func @transform_3(%arg0: i32, %arg1: i32) -> (i32, i32) {
    %c0_i32 = arith.constant 0 : i32
    %c0_i32_0 = arith.constant 0 : i32
    return %arg0, %c0_i32 : i32, i32
  }
  func.func @transform_4(%arg0: i32, %arg1: i32) -> (i32, i32, i32) {
    %c0_i32 = arith.constant 0 : i32
    %c0_i32_0 = arith.constant 0 : i32
    return %arg1, %arg0, %c0_i32 : i32, i32, i32
  }
}

</mosaic_0001>

<bundles_post_ra>
// kernel: tpu_custom_call.1
= control target key start
LH: loop header
LB: loop body
LE: loop exit
PB: predicated region body
PF: predicated region fallthrough
CT: control target
= control target key end

     0   :  { %9 = vsyncpa [#allocation3], 0  ;;  %s853_s0 = inlined_call_operand.vmem [shape: f32[2,8,6], index: 0, kind: input, shape index: {}]   ;;  %s854_s1 = inlined_call_operand.vmem [shape: f32[6,128], index: 1, kind: input, shape index: {}]   ;;  %s855_s2 = inlined_call_operand.vmem [shape: f32[3,128], index: 2, kind: input, shape index: {}]   ;;  %s856_s3 = inlined_call_operand.hbm [shape: f32[64,128], index: 3, kind: input, shape index: {}]   ;;  %s857_s4 = inlined_call_operand.hbm [shape: f32[2,8,128], index: 4, kind: output, shape index: {}]  }
   0x1   :  { %10 = vsyncpa [#allocation4], 0 }
   0x2   :  { %12 = vsyncpa [#allocation4 + $0x1], 0  ;;  %s688_s15 = smov 0   ;;  %s690_s16 = smov 0  }
   0x3   :  { %s692_s17 = smov 0   ;;  %s694_s18 = smov 0  }
   0x4   :  { %s696_s19 = smov 0   ;;  %s698_s20 = smov 0  }
   0x5 LB: > { %s452_s21 = sadd.s32 4294967295, %s657_s20   ;;  %s453_s22 = sadd.s32 4294967294, %s657_s20   ;;  %s657_s20 = sphi %s698_s20, %s18_s20   ;;  %s653_s19 = sphi %s696_s19, %s875_s19   ;;  %s649_s18 = sphi %s694_s18, %s874_s18   ;;  %s645_s17 = sphi %s692_s17, %s873_s17   ;;  %s641_s16 = sphi %s690_s16, %s872_s16   ;;  %s637_s15 = sphi %s688_s15, %s871_s15  }
   0x6   : > { %s27_s23 = sadd.s32 1, %s653_s19  ;;  %s135_s24 = sadd.s32 1, %s645_s17 }
   0x7   : > { %p28_p0 = scmp.ge.s32.totalorder %s27_s23, 2  ;;  %p145_p1 = scmp.ne.s32.totalorder %s645_s17, %s641_s16 }
   0x8   : > { %p146_p2 = scmp.eq.s32.totalorder %s452_s21, 1  ;;  %p151_p3 = scmp.ne.s32.totalorder %s641_s16, %s637_s15 }
   0x9   : > { %s877_s23 = smov (%p28_p0, %s27_s23), 0  ;;  %p152_p5 = scmp.eq.s32.totalorder %s453_s22, 1 }
   0xa   : > { %p728_p4 = por %p146_p2, %p145_p1  ;;  %s130_s26 = ssub.s32 %s653_s19, %s877_s23 }
   0xb   : > { %p454_p6 = scmp.ge.s32.totalorder %s657_s20, 1  ;;  %p133_p7 = scmp.eq.s32.totalorder %s130_s26, 0 }
   0xc   : > { %s862_s25 = scalar_select %p728_p4, 1, 0 }
   0xd   : > { %p735_p8 = por %p152_p5, %p151_p3  ;;  %p159_p9 = scmp.lt.s32.totalorder %s657_s20, 3 }
   0xe   : > { %s741_s28 = scalar_select %p133_p7, %s645_s17, %s135_s24  }
   0xf   : > { %s863_s27 = scalar_select %p735_p8, 1, 0 }
  0x10   : > { %p743_p10 = pnand %p454_p6, %p159_p9  ;;  %p747_p11 = scmp.eq.s32.totalorder %s452_s21, 0 }
  0x11   : > { %s659_s5 = smov [#allocation2]   ;;  %s547_s10 = scalar_lea.hbm %s856_s3, 128 }
  0x12   : > { %s864_s29 = scalar_select %p743_p10, 1, 0 }
  0x13   : > { %s865_s30 = scalar_select %p747_p11, 1, 0 }
  0x14   : > { %p483_p12 = pneg %p743_p10  ;;  %s180_s6 = sshll.u32 %s659_s5, 4  ;;  %s181_s6 = int_to_ptr.vmem [resolvable:$true] %s180_s6 }
  0x15   : > { %p548_p0 = scmp.ne.s32.totalorder %s856_s3, %s547_s10  ;;  %s552_s21 = scalar_lea.hbm %s856_s3, 1024 }
  0x16   : > { %p755_p13 = pnand %p747_p11, %p483_p12  ;;  %p553_p5 = scmp.lt.u32.totalorder %s552_s21, %s547_s10 }
  0x17   : > { %p554_p6 = scmp.lt.u32.totalorder %s547_s10, %s856_s3 }
  0x18   : > { %p549_p1 = pneg %p755_p13 }
  0x19   : > { %p555_p7 = por %p554_p6, %p553_p5 }
  0x1a   : > { %p550_p2 = pnand %p549_p1, %p548_p0 }
  0x1c   : > { %p551_p3 = pneg %p550_p2 }
  0x1e   : > { %p556_p9 = pnand %p555_p7, %p551_p3 }
  0x20   : > { %559 = shalt.err (!%p556_p9)
}
  0x21   : > { %s560_s26 = scalar_lea.vmem %s181_s6, 128  ;;  %p568_p11 = scmp.lt.s32.totalorder %s181_s6, %s181_s6 }
  0x22   : > { %p561_p12 = scmp.ne.s32.totalorder %s181_s6, %s560_s26  ;;  %p569_p10 = scmp.lt.s32.totalorder %s560_s26, %s560_s26 }
  0x24   : > { %p563_p8 = pnand %p561_p12, %p549_p1  ;;  %p570_p0 = por %p569_p10, %p568_p11 }
  0x26   : > { %p564_p4 = pneg %p563_p8 }
  0x28   : > { %p571_p2 = pnand %p570_p0, %p564_p4 }
  0x2a   : > { %574 = shalt.err (!%p571_p2)
}
  0x2b   : > { %486 = dma.hbm_to_vmem [thread:$0]  (!%p755_p13), %s856_s3, 128, %s181_s6, [#allocation3]  }
  0x2c   : > { %p867_p5 = scmp.ne.s32.totalorder %s864_s29, 0 }
  0x2d   : > { %p868_p3 = scmp.ne.s32.totalorder (!%p867_p5), %s865_s30, 0 }
  0x2e   : > { %203 = sbr.rel (%p867_p5) target bundleno = 460 (0x1cc), region = 36 }
  0x35   : > { %628 = dma.done.wait (%p868_p3), [#allocation3], 128  }
  0x36   : > { %630 = vsyncadd (%p868_p3), [#allocation3], 4294967168  ;;  %p231_p8 = scmp.lt.s32.totalorder %s649_s18, 1  ;;  %v660_v0 = vmov 0.0   ;;  %vm661_vm0 = vmmov 0   ;;  %vm249_vm1 = vcmask 1045504  }
  0x37   : > { %472 = vmatprep.subr.mxu0 %v660_v0  ;;  %474 = vmatprep.mubr.msk.f32.mxu0 %vm661_vm0, %v660_v0  ;;  %vm245_vm2 = vcmask 48128   ;;  %v239_v1 = vld [vmem:[%s854_s1] sm:$0x3f]  ;;  %s228_s14 = sand.u32 1, %s641_s16   ;;  %v349_v21 = vld [vmem:[#allocation2] sm:$0xff]  ;;  %s467_s8 = sshll.u32 %s649_s18, 7 }
  0x38   : > { %s232_s7 = scalar_select %p231_p8, %s649_s18, 1  ;;  %473 = vmatpush3.msk.msra.mxu0 %vm249_vm1, %v239_v1  ;;  %v461_v3 = vld [vmem:[%s855_s2] ss:$0 sm:$0xff]  ;;  %v464_v15 = vld [vmem:[%s855_s2 + $0x1] ss:$0 sm:$0xff] }
  0x39   : > { %s459_s24 = sshll.u32 %s228_s14, 3  ;;  %v465_v19 = vld [vmem:[%s855_s2 + $0x2] ss:$0 sm:$0xff]  ;;  %s353_s11 = scalar_lea.sflag [#allocation4], %s228_s14 }
  0x3a   : > { %s460_s9 = sshll.u32 %s232_s7, 3  ;;  %s230_s7 = scalar_lea.vmem [#allocation5], %s459_s24 }
  0x3b   : > { %s237_s29 = scalar_lea.vmem %s853_s0, %s460_s9  ;;  %s367_s9 = sshll.u32 %s230_s7, 4  ;;  %s808_s9 = int_to_ptr.vmem [resolvable:$true] %s367_s9 }
  0x3c   : > { %v238_v2 = vld [vmem:[%s237_s29] sm:$0xff]  ;;  %s806_s29 = scalar_lea.hbm %s857_s4, %s467_s8  ;;  %s575_s12 = scalar_lea.vmem %s808_s9, 128 }
  0x3d   : > { %475 = vmatmul.mubr.msk.f32.vlgmr.msra.gmra.mrb[0].mxu0 %vm245_vm2, %v238_v2  ;;  %p576_p4 = scmp.ne.s32.totalorder %s808_s9, %s575_s12  ;;  %p869_p10 = scmp.ne.s32.totalorder %s862_s25, 0 }
  0x3e   : > { %s662_s18 = smov [#allocation5]  }
  0x3f   : > { %p577_p11 = pnand %p576_p4, %p869_p10  ;;  %s579_s30 = sshll.u32 %s662_s18, 4  ;;  %s580_s30 = int_to_ptr.vmem [resolvable:$false] %s579_s30 }
  0x40   : > { %s581_s13 = scalar_lea.vmem %s580_s30, 256  ;;  %p582_p1 = scmp.lt.s32.totalorder %s808_s9, %s580_s30 }
  0x41   : > { %p578_p13 = pneg %p577_p11  ;;  %p583_p6 = scmp.lt.s32.totalorder %s581_s13, %s575_s12 }
  0x43   : > { %p584_p7 = por %p583_p6, %p582_p1 }
  0x45   : > { %p585_p9 = pnand %p584_p7, %p578_p13 }
 0x110   : > { %v319_v4 = vpop.f32.mrb[0].mxu0 }
 0x111   : > { %v320_v5 = vadd.f32 %v461_v3, %v319_v4  ;;  %v476_v6 = vpop.f32.mrb[1].mxu0 }
 0x113   : > { %323 = vadd.xlane.f32.xlu0 %v320_v5  ;;  %v327_v7 = vmul.f32 %v320_v5, %v320_v5 }
 0x117   : > { %328 = vadd.xlane.f32.xlu0 %v327_v7 }
 0x1a0   : > { %v324_v8 = vpop.xlane.xlu0 %323 }
 0x1a1   : > { %v326_v9 = vmul.f32 0.0078125, %v324_v8 }
 0x1a3   : > { %v331_v11 = vmul.f32 %v326_v9, %v326_v9  ;;  %v341_v17 = vsub.f32 %v320_v5, %v326_v9 }
 0x1a4   : > { %v329_v10 = vpop.xlane.xlu0 %328 }
 0x1a5   : > { %v330_v12 = vmul.f32 0.0078125, %v329_v10 }
 0x1a7   : > { %v332_v13 = vsub.f32 %v330_v12, %v331_v11 }
 0x1a9   : > { %v334_v14 = vadd.f32 1e-05, %v332_v13 }
 0x1ab   : > { %545 = vrsqrt.f32 %v334_v14 }
 0x1b5   : > { %v546_v16 = vpop.eup %545 }
 0x1b6   : > { %v340_v18 = vmul.f32 %v546_v16, %v464_v15 }
 0x1b8   : > { %v342_v20 = vmul.f32 %v341_v17, %v340_v18 }
 0x1ba   : > { %v348_v22 = vadd.f32 %v465_v19, %v342_v20 }
 0x1bc   : > { %v350_v23 = vadd.f32 %v349_v21, %v348_v22 }
 0x1be   : > { %351 = vst [vmem:[%s230_s7] sm:$0xff] %v350_v23 }
 0x1bf   : > { %588 = shalt.err (!%p585_p9)
}
 0x1c0   : > { %s589_s14 = scalar_lea.hbm %s806_s29, 128  ;;  %s593_s24 = scalar_lea.hbm %s857_s4, 256 }
 0x1c1   : > { %p590_p12 = scmp.ne.s32.totalorder %s806_s29, %s589_s14  ;;  %p594_p5 = scmp.lt.u32.totalorder %s806_s29, %s857_s4 }
 0x1c2   : > { %p595_p3 = scmp.lt.u32.totalorder %s593_s24, %s589_s14  ;;  %p597_p4 = scmp.lt.u32.totalorder %s589_s14, %s806_s29 }
 0x1c3   : > { %p591_p0 = pnand %p590_p12, %p869_p10 }
 0x1c4   : > { %p596_p8 = por %p595_p3, %p594_p5 }
 0x1c5   : > { %p592_p2 = pneg %p591_p0 }
 0x1c6   : > { %p598_p11 = por %p597_p4, %p596_p8 }
 0x1c8   : > { %p599_p13 = pnand %p598_p11, %p592_p2 }
 0x1ca   : > { %602 = shalt.err (!%p599_p13)
}
 0x1cb   : > { %481 = dma.vmem_to_hbm [thread:$0]  (%p869_p10), %s808_s9, 128, %s806_s29, %s353_s11  }
 0x1cc PF: > { %p493_p1 = scmp.ge.s32.totalorder %s657_s20, 2  ;;  %s379_s8 = sand.u32 1, %s637_s15  }
 0x1cd   : > { %p870_p6 = scmp.ne.s32.totalorder %s863_s27, 0  ;;  %s380_s7 = scalar_lea.sflag [#allocation4], %s379_s8 }
 0x1cf   : > { %p488_p7 = pnand %p493_p1, %p870_p6 }
 0x1d1   : > { %632 = dma.done.wait (!%p488_p7), %s380_s7, 128  }
 0x1d2   : > { %634 = vsyncadd (!%p488_p7), %s380_s7, 4294967168  ;;  %s18_s20 = sadd.s32 1, %s657_s20   ;;  %s871_s15 = smov %s641_s16 }
 0x1d3   : > { %p15_p9 = scmp.ge.s32.totalorder %s18_s20, 4   ;;  %s872_s16 = smov %s645_s17 }
 0x1d4   : > { %s873_s17 = smov %s741_s28  ;;  %s874_s18 = smov %s653_s19 }
 0x1d5   : > { %s875_s19 = smov %s877_s23  ;;  %17 = sbr.rel (!%p15_p9) target bundleno = 5 (0x5), region = 77 }
 0x1dc   :  { %385 = vsyncpa [#allocation3], 1 }
 0x1dd   :  { %387 = vsyncpa [#allocation3 + $0x1], 1 }
 0x1de   :  { %388 = vsyncpa [#allocation4], 1 }
 0x1df   :  { %390 = vsyncpa [#allocation4 + $0x1], 1 }

</bundles_post_ra>
